<compile_context>
chip_gen: v6e
topology: v6e:2x2x1
jax: 0.10.0
libtpu: 0.0.40
codegen_flags: <defaults>
</compile_context>

<pallas_src>
import numpy as np
import jax
import jax.numpy as jnp
from jax import lax
from jax.experimental import pallas as pl
from jax.experimental.pallas import tpu as pltpu


def _grad_loss_kernel(gt_ref, dt_ref, trig_ref, out_ref):
    B, W = gt_ref.shape
    shift_next = W - 1                # roll(x, W-1, axis=1)[i] == x[(i+1) % W]
    sl = trig_ref[0:1, :]             # (1, W) sin(lon)
    cl = trig_ref[1:2, :]             # (1, W) cos(lon)

    g = gt_ref[...]                   # (B, W)
    d = dt_ref[...]                   # (B, W)

    # Pack all four planar components on sublanes: [gt_x; dt_x; gt_z; dt_z]
    # -> (4B, W) (= full 8-sublane vregs at B=2), so a single XLU roll covers
    # every circular edge difference.
    xz = jnp.concatenate([g * sl, d * sl, g * cl, d * cl], axis=0)    # (4B, W)
    edge = pltpu.roll(xz, shift_next, 1) - xz                         # (4B, W)

    dxs = edge[: 2 * B, :]            # (2B, W): [gt dx ; dt dx]
    dzs = edge[2 * B :, :]            # (2B, W): [gt dz ; dt dz]
    gdx, ddx = dxs[:B, :], dxs[B:, :]
    gdz, ddz = dzs[:B, :], dzs[B:, :]

    # CosineSimilarity(dim=-1, eps=0) over the 2-vector (dx, dz):
    #   1 - dot / (||g|| * ||d||); the two rsqrt factors are kept separate
    #   (matches torch's norm product; avoids product under/overflow).
    dot = gdx * ddx + gdz * ddz
    gsq = gdx * gdx + gdz * gdz
    dsq = ddx * ddx + ddz * ddz
    one_minus_cos = 1.0 - dot * (lax.rsqrt(gsq) * lax.rsqrt(dsq))     # (B, W)

    # Single packed atan2 chain for gt and dt; the circular conv [1, 0, -1] is
    # linear, so apply it once to the angle difference.
    angle = jnp.arctan2(dzs, dxs)                                     # (2B, W)
    e = angle[:B, :] - angle[B:, :]                                   # (B, W)
    diff_grad = pltpu.roll(e, 1, 1) - pltpu.roll(e, shift_next, 1)    # (B, W)

    # Fused reduction: stack both per-element loss maps on sublanes, one
    # cross-lane reduce, then split-sum the halves. Normalize in-kernel.
    stacked = jnp.concatenate([one_minus_cos, jnp.abs(diff_grad)], axis=0)  # (2B, W)
    col = jnp.sum(stacked, axis=1, keepdims=True)                     # (2B, 1)

    inv_n = 1.0 / (B * W)
    out_ref[0] = jnp.sum(col[:B, :]) * inv_n                          # normal_loss
    out_ref[1] = jnp.sum(col[B:, :]) * inv_n                          # grad_loss


@jax.jit
def grad_loss(gt_depth, dt_depth):
    B, W = gt_depth.shape

    # Longitude of each panorama column (fixed geometry); precomputed host-side
    # with numpy at trace time so no on-device EUP is spent on sin/cos.
    lon = ((np.arange(W, dtype=np.float64) + 0.5) / W - 0.5) * (2.0 * np.pi)
    trig = jnp.asarray(
        np.stack([np.sin(lon), np.cos(lon)]).astype(np.float32))      # (2, W)

    out = pl.pallas_call(
        _grad_loss_kernel,
        out_shape=jax.ShapeDtypeStruct((2,), jnp.float32),
        grid=(1,),
        in_specs=[pl.BlockSpec((B, W), lambda i: (0, 0)),
                  pl.BlockSpec((B, W), lambda i: (0, 0)),
                  pl.BlockSpec((2, W), lambda i: (0, 0))],
        out_specs=pl.BlockSpec(memory_space=pltpu.MemorySpace.SMEM),
        compiler_params=pltpu.CompilerParams(
            dimension_semantics=("arbitrary",)),
    )(gt_depth.astype(jnp.float32), dt_depth.astype(jnp.float32), trig)

    return out[0], out[1]


if __name__ == "__main__":
    key = jax.random.PRNGKey(0)
    kg, kd = jax.random.split(key)
    B, W = 2, 256
    # positive horizon depths (gt) and a perturbed prediction (dt)
    gt_depth = jax.random.uniform(kg, (B, W), jnp.float32, minval=1.0, maxval=4.0)
    dt_depth = gt_depth + 0.1 * jax.random.normal(kd, (B, W), dtype=jnp.float32)

    gt = {"depth": gt_depth}
    dt = {"depth": dt_depth}

    normal_loss, grad_loss_val = grad_loss(gt["depth"], dt["depth"])
    jax.block_until_ready((normal_loss, grad_loss_val))
    print("KERNEL_OK")
</pallas_src>

<mosaic_0001>
module attributes {stable_mosaic.version = 11 : i64} {
  func.func @_grad_loss_kernel(%arg0: i32, %arg1: memref<2x256xf32, #tpu.memory_space<vmem>>, %arg2: memref<2x256xf32, #tpu.memory_space<vmem>>, %arg3: memref<2x256xf32, #tpu.memory_space<vmem>>, %arg4: memref<2xf32, #tpu.memory_space<smem>>) attributes {dimension_semantics = [#tpu.dimension_semantics<arbitrary>], iteration_bounds = array<i64: 1>, scalar_prefetch = 0 : i64, scratch_operands = 0 : i64, tpu.core_type = #tpu.core_type<tc>, window_params = [{pipeline_mode = #tpu.pipeline_mode<synchronous>, transform_indices = @transform_0, window_bounds = array<i64: 2, 256>}, {pipeline_mode = #tpu.pipeline_mode<synchronous>, transform_indices = @transform_1, window_bounds = array<i64: 2, 256>}, {pipeline_mode = #tpu.pipeline_mode<synchronous>, transform_indices = @transform_2, window_bounds = array<i64: 2, 256>}, {transform_indices = @transform_3, window_bounds = array<i64: 2>}]} {
    %c0 = arith.constant 0 : index
    %c0_0 = arith.constant 0 : index
    %0 = vector.load %arg3[%c0, %c0_0] : memref<2x256xf32, #tpu.memory_space<vmem>>, vector<1x256xf32>
    %c1 = arith.constant 1 : index
    %c0_1 = arith.constant 0 : index
    %1 = vector.load %arg3[%c1, %c0_1] : memref<2x256xf32, #tpu.memory_space<vmem>>, vector<1x256xf32>
    %c0_2 = arith.constant 0 : index
    %c0_3 = arith.constant 0 : index
    %2 = vector.load %arg1[%c0_2, %c0_3] : memref<2x256xf32, #tpu.memory_space<vmem>>, vector<2x256xf32>
    %c0_4 = arith.constant 0 : index
    %c0_5 = arith.constant 0 : index
    %3 = vector.load %arg2[%c0_4, %c0_5] : memref<2x256xf32, #tpu.memory_space<vmem>>, vector<2x256xf32>
    %4 = vector.broadcast %0 : vector<1x256xf32> to vector<2x256xf32>
    %5 = arith.mulf %2, %4 : vector<2x256xf32>
    %6 = vector.broadcast %0 : vector<1x256xf32> to vector<2x256xf32>
    %7 = arith.mulf %3, %6 : vector<2x256xf32>
    %8 = vector.broadcast %1 : vector<1x256xf32> to vector<2x256xf32>
    %9 = arith.mulf %2, %8 : vector<2x256xf32>
    %10 = vector.broadcast %1 : vector<1x256xf32> to vector<2x256xf32>
    %11 = arith.mulf %3, %10 : vector<2x256xf32>
    %12 = tpu.concatenate %5, %7, %9, %11 in 0 : vector<2x256xf32>, vector<2x256xf32>, vector<2x256xf32>, vector<2x256xf32> -> vector<8x256xf32>
    %c255_i32 = arith.constant 255 : i32
    %13 = tpu.dynamic_rotate %12 by %c255_i32 dim 1 : vector<8x256xf32>, i32 -> vector<8x256xf32>
    %14 = arith.subf %13, %12 : vector<8x256xf32>
    %15 = vector.extract_strided_slice %14 {offsets = [0, 0], sizes = [4, 256], strides = [1, 1]} : vector<8x256xf32> to vector<4x256xf32>
    %16 = vector.extract_strided_slice %14 {offsets = [4, 0], sizes = [4, 256], strides = [1, 1]} : vector<8x256xf32> to vector<4x256xf32>
    %17 = vector.extract_strided_slice %15 {offsets = [0, 0], sizes = [2, 256], strides = [1, 1]} : vector<4x256xf32> to vector<2x256xf32>
    %18 = vector.extract_strided_slice %15 {offsets = [2, 0], sizes = [2, 256], strides = [1, 1]} : vector<4x256xf32> to vector<2x256xf32>
    %19 = vector.extract_strided_slice %16 {offsets = [0, 0], sizes = [2, 256], strides = [1, 1]} : vector<4x256xf32> to vector<2x256xf32>
    %20 = vector.extract_strided_slice %16 {offsets = [2, 0], sizes = [2, 256], strides = [1, 1]} : vector<4x256xf32> to vector<2x256xf32>
    %21 = arith.mulf %17, %18 : vector<2x256xf32>
    %22 = arith.mulf %19, %20 : vector<2x256xf32>
    %23 = arith.addf %21, %22 : vector<2x256xf32>
    %24 = arith.mulf %17, %17 : vector<2x256xf32>
    %25 = arith.mulf %19, %19 : vector<2x256xf32>
    %26 = arith.addf %24, %25 : vector<2x256xf32>
    %27 = arith.mulf %18, %18 : vector<2x256xf32>
    %28 = arith.mulf %20, %20 : vector<2x256xf32>
    %29 = arith.addf %27, %28 : vector<2x256xf32>
    %30 = math.rsqrt %26 : vector<2x256xf32>
    %31 = math.rsqrt %29 : vector<2x256xf32>
    %32 = arith.mulf %30, %31 : vector<2x256xf32>
    %33 = arith.mulf %23, %32 : vector<2x256xf32>
    %cst = arith.constant 1.000000e+00 : f32
    %34 = vector.broadcast %cst : f32 to vector<2x256xf32>
    %35 = arith.subf %34, %33 : vector<2x256xf32>
    %36 = math.atan2 %16, %15 : vector<4x256xf32>
    %37 = vector.extract_strided_slice %36 {offsets = [0, 0], sizes = [2, 256], strides = [1, 1]} : vector<4x256xf32> to vector<2x256xf32>
    %38 = vector.extract_strided_slice %36 {offsets = [2, 0], sizes = [2, 256], strides = [1, 1]} : vector<4x256xf32> to vector<2x256xf32>
    %39 = arith.subf %37, %38 : vector<2x256xf32>
    %c1_i32 = arith.constant 1 : i32
    %40 = tpu.dynamic_rotate %39 by %c1_i32 dim 1 : vector<2x256xf32>, i32 -> vector<2x256xf32>
    %c255_i32_6 = arith.constant 255 : i32
    %41 = tpu.dynamic_rotate %39 by %c255_i32_6 dim 1 : vector<2x256xf32>, i32 -> vector<2x256xf32>
    %42 = arith.subf %40, %41 : vector<2x256xf32>
    %43 = math.absf %42 : vector<2x256xf32>
    %44 = tpu.concatenate %35, %43 in 0 : vector<2x256xf32>, vector<2x256xf32> -> vector<4x256xf32>
    %cst_7 = arith.constant dense<0.000000e+00> : vector<4xf32>
    %45 = vector.multi_reduction <add>, %44, %cst_7 [1] : vector<4x256xf32> to vector<4xf32>
    %46 = vector.shape_cast %45 : vector<4xf32> to vector<4x1xf32>
    %47 = vector.extract_strided_slice %46 {offsets = [0, 0], sizes = [2, 1], strides = [1, 1]} : vector<4x1xf32> to vector<2x1xf32>
    %48 = vector.shape_cast %47 : vector<2x1xf32> to vector<1x2x1xf32>
    %cst_8 = arith.constant dense<0.000000e+00> : vector<1xf32>
    %49 = vector.multi_reduction <add>, %48, %cst_8 [1, 2] : vector<1x2x1xf32> to vector<1xf32>
    %50 = vector.shape_cast %49 : vector<1xf32> to vector<1x1x1xf32>
    %51 = vector.extract %50[0, 0, 0] : f32 from vector<1x1x1xf32>
    %cst_9 = arith.constant 0.001953125 : f32
    %52 = arith.mulf %51, %cst_9 : f32
    %c0_10 = arith.constant 0 : index
    %53 = memref.load %arg4[%c0_10] : memref<2xf32, #tpu.memory_space<smem>>
    memref.store %52, %arg4[%c0_10] : memref<2xf32, #tpu.memory_space<smem>>
    %54 = vector.extract_strided_slice %46 {offsets = [2, 0], sizes = [2, 1], strides = [1, 1]} : vector<4x1xf32> to vector<2x1xf32>
    %55 = vector.shape_cast %54 : vector<2x1xf32> to vector<1x2x1xf32>
    %cst_11 = arith.constant dense<0.000000e+00> : vector<1xf32>
    %56 = vector.multi_reduction <add>, %55, %cst_11 [1, 2] : vector<1x2x1xf32> to vector<1xf32>
    %57 = vector.shape_cast %56 : vector<1xf32> to vector<1x1x1xf32>
    %58 = vector.extract %57[0, 0, 0] : f32 from vector<1x1x1xf32>
    %cst_12 = arith.constant 0.001953125 : f32
    %59 = arith.mulf %58, %cst_12 : f32
    %c1_13 = arith.constant 1 : index
    %60 = memref.load %arg4[%c1_13] : memref<2xf32, #tpu.memory_space<smem>>
    memref.store %59, %arg4[%c1_13] : memref<2xf32, #tpu.memory_space<smem>>
    return
  }
  func.func @transform_0(%arg0: i32) -> (i32, i32) {
    %c0_i32 = arith.constant 0 : i32
    %c0_i32_0 = arith.constant 0 : i32
    %c0_i32_1 = arith.constant 0 : i32
    return %c0_i32, %c0_i32_0 : i32, i32
  }
  func.func @transform_1(%arg0: i32) -> (i32, i32) {
    %c0_i32 = arith.constant 0 : i32
    %c0_i32_0 = arith.constant 0 : i32
    %c0_i32_1 = arith.constant 0 : i32
    return %c0_i32, %c0_i32_0 : i32, i32
  }
  func.func @transform_2(%arg0: i32) -> (i32, i32) {
    %c0_i32 = arith.constant 0 : i32
    %c0_i32_0 = arith.constant 0 : i32
    %c0_i32_1 = arith.constant 0 : i32
    return %c0_i32, %c0_i32_0 : i32, i32
  }
  func.func @transform_3(%arg0: i32) -> i32 {
    %c0_i32 = arith.constant 0 : i32
    %c0_i32_0 = arith.constant 0 : i32
    return %c0_i32 : i32
  }
}

</mosaic_0001>

<bundles_post_ra>
// kernel: grad_loss.1
= control target key start
LH: loop header
LB: loop body
LE: loop exit
PB: predicated region body
PF: predicated region fallthrough
CT: control target
= control target key end

     0   :  { %8 = vsyncpa [#allocation3], 0  ;;  %s624_s0 = inlined_call_operand.hbm [shape: f32[2,256], index: 0, kind: input, shape index: {}]   ;;  %s625_s1 = inlined_call_operand.hbm [shape: f32[2,256], index: 1, kind: input, shape index: {}]   ;;  %s626_s2 = inlined_call_operand.hbm [shape: f32[2,256], index: 2, kind: input, shape index: {}]   ;;  %s627_s3 = inlined_call_operand.vmem [shape: f32[2], index: 3, kind: output, shape index: {}]  }
   0x1   :  { %9 = vsyncpa [#allocation6], 0 }
   0x2   :  { %10 = vsyncpa [#allocation4], 0  ;;  %s489_s12 = smov [#allocation5]   ;;  %s490_s14 = smov [#allocation2]  }
   0x3   :  { %s27_s13 = sshll.u32 %s489_s12, 4  ;;  %s17_s15 = sshll.u32 %s490_s14, 4  ;;  %s28_s13 = int_to_ptr.vmem [resolvable:$true] %s27_s13  ;;  %s18_s15 = int_to_ptr.vmem [resolvable:$true] %s17_s15 }
   0x4   :  { %s419_s16 = scalar_lea.vmem %s28_s13, 64  ;;  %p424_p1 = scmp.lt.s32.totalorder %s28_s13, %s28_s13 }
   0x5   :  { %p420_p0 = scmp.ne.s32.totalorder %s28_s13, %s419_s16  ;;  %p425_p2 = scmp.lt.s32.totalorder %s419_s16, %s419_s16 }
   0x7   :  { %p426_p3 = por %p425_p2, %p424_p1 }
   0x9   :  { %p427_p4 = pnand %p426_p3, %p420_p0 }
   0xb   :  { %430 = shalt.err (!%p427_p4)
}
   0xc   :  { %30 = dma.hbm_to_vmem [thread:$0]  %s625_s1, 64, %s28_s13, [#allocation6]  }
   0xd   :  { %s439_s19 = scalar_lea.vmem %s18_s15, 64  ;;  %p444_p6 = scmp.lt.s32.totalorder %s18_s15, %s18_s15 }
   0xe   :  { %p440_p5 = scmp.ne.s32.totalorder %s18_s15, %s439_s19  ;;  %p445_p7 = scmp.lt.s32.totalorder %s439_s19, %s439_s19 }
  0x10   :  { %p446_p8 = por %p445_p7, %p444_p6 }
  0x12   :  { %p447_p9 = pnand %p446_p8, %p440_p5 }
  0x14   :  { %450 = shalt.err (!%p447_p9)
}
  0x15   :  { %20 = dma.hbm_to_vmem [thread:$0]  %s624_s0, 64, %s18_s15, [#allocation3]  }
  0x16   :  { %s491_s22 = smov [#allocation7]  }
  0x17   :  { %s37_s23 = sshll.u32 %s491_s22, 4  ;;  %s38_s23 = int_to_ptr.vmem [resolvable:$true] %s37_s23 }
  0x18   :  { %s459_s24 = scalar_lea.vmem %s38_s23, 64  ;;  %p464_p11 = scmp.lt.s32.totalorder %s38_s23, %s38_s23 }
  0x19   :  { %p460_p10 = scmp.ne.s32.totalorder %s38_s23, %s459_s24  ;;  %p465_p12 = scmp.lt.s32.totalorder %s459_s24, %s459_s24 }
  0x1b   :  { %p466_p13 = por %p465_p12, %p464_p11 }
  0x1d   :  { %p467_p0 = pnand %p466_p13, %p460_p10 }
  0x1f   :  { %470 = shalt.err (!%p467_p0)
}
  0x20   :  { %40 = dma.hbm_to_vmem [thread:$0]  %s626_s2, 64, %s38_s23, [#allocation6]  }
  0x21   :  { %483 = dma.done.wait [#allocation3], 64  }
  0x22   :  { %484 = vsyncadd [#allocation3], 4294967232 }
  0x23   :  { %485 = dma.done.wait [#allocation6], 128  }
  0x24   :  { %486 = vsyncadd [#allocation6], 4294967168  ;;  %v56_v0 = vlaneseq  ;;  %v492_v1 = vmov 1983009808   ;;  %v53_v16 = vld [vmem:[#allocation2] sm:$0xf] }
  0x25   :  { %v66_v2 = vunpack.c.l.s4 %v492_v1  ;;  %v50_v7 = vld [vmem:[#allocation7] ss:$2 sm:$0x3]  ;;  %v52_v8 = vld [vmem:[#allocation7 + $0x1] ss:$2 sm:$0x3] }
  0x26   :  { %v57_v3 = vshrl.u32 %v56_v0, 7  ;;  %v54_v17 = vld [vmem:[#allocation5] sm:$0xf]  ;;  %vm141_vm0 = vcmask 1041408   ;;  %vm144_vm1 = vcmask 1043456   ;;  %vm147_vm2 = vcmask 1045504  }
  0x27   :  { %v67_v4 = vunpack.c.0.s8 %v66_v2  ;;  %s493_s0 = smov 127   ;;  %v533_v40 = vand.u32 127, %v56_v0  ;;  %s496_s2 = smov 1  }
  0x28   :  { %v58_v5 = vsub.s32 0, %v57_v3  ;;  %v62_v6 = vsub.s32 1, %v57_v3  ;;  %s379_s28 = sshll.u32 %s627_s3, 4  ;;  %s380_s28 = int_to_ptr.vmem [resolvable:$true] %s379_s28 }
  0x29   :  { %v70_v9 = vsub.s32 %v67_v4, %v57_v3  ;;  %vm156_vm3 = vcmp.lt.s32.totalorder %v533_v40, 127  ;;  %s471_s6 = scalar_lea.vmem %s380_s28, 16  ;;  %p476_p2 = scmp.lt.s32.totalorder %s380_s28, %s380_s28 }
  0x2a   :  { %v59_v10 = vrot.slane %v50_v7, %v58_v5  ;;  %v63_v11 = vrot.slane %v50_v7, %v62_v6  ;;  %v79_v12 = vrot.slane %v52_v8, %v58_v5  ;;  %v83_v13 = vrot.slane %v52_v8, %v62_v6  ;;  %p472_p1 = scmp.ne.s32.totalorder %s380_s28, %s471_s6  ;;  %p477_p3 = scmp.lt.s32.totalorder %s471_s6, %s471_s6 }
  0x2c   :  { %v64_v14 = vcombine.low %v59_v10, %v63_v11  ;;  %v84_v15 = vcombine.low %v79_v12, %v83_v13  ;;  %p478_p4 = por %p477_p3, %p476_p2 }
  0x2e   :  { %v71_v18 = vrot.slane %v64_v14, %v70_v9  ;;  %v91_v19 = vrot.slane %v84_v15, %v70_v9  ;;  %p479_p5 = pnand %p478_p4, %p472_p1 }
  0x30   :  { %v73_v20 = vmul.f32 %v71_v18, %v53_v16  ;;  %v74_v21 = vmul.f32 %v71_v18, %v54_v17  ;;  %v93_v22 = vmul.f32 %v91_v19, %v53_v16  ;;  %v94_v23 = vmul.f32 %v91_v19, %v54_v17 }
  0x32   :  { %v102_v24 = vrot.slane %v73_v20, %v70_v9  ;;  %v107_v25 = vcombine.low %v74_v21, %v74_v21  ;;  %v125_v26 = vrot.slane %v93_v22, %v70_v9  ;;  %v130_v27 = vcombine.low %v94_v23, %v94_v23 }
  0x34   :  { %v114_v28 = vrot.slane %v107_v25, %v70_v9  ;;  %v126_v29 = vcombine.low %v125_v26, %v125_v26  ;;  %v137_v30 = vrot.slane %v130_v27, %v70_v9  ;;  %v103_v31 = vcombine.high %v102_v24, %v102_v24 }
  0x36   :  { %v138_v32 = vcombine.low %v137_v30, %v137_v30  ;;  %v142_v33 = vsel %vm141_vm0, %v102_v24, %v114_v28  ;;  %v115_v34 = vcombine.high %v114_v28, %v114_v28 }
  0x37   :  { %v145_v35 = vsel %vm144_vm1, %v142_v33, %v126_v29 }
  0x38   :  { %v148_v36 = vsel %vm147_vm2, %v145_v35, %v138_v32  ;;  %v143_v37 = vsel %vm141_vm0, %v103_v31, %v115_v34 }
  0x39   :  { %150 = vrot.lane.b32.xlu0 %v148_v36, %s493_s0  ;;  %v146_v38 = vsel %vm144_vm1, %v143_v37, %v125_v26 }
  0x3a   :  { %v149_v39 = vsel %vm147_vm2, %v146_v38, %v137_v30  ;;  %v494_v38 = vmov 0.0  }
  0x3d   :  { %152 = vrot.lane.b32.xlu0 %v149_v39, %s493_s0 }
  0xab   :  { %v151_v41 = vpop.permute.xlu0 %150 }
  0xaf   :  { %v153_v42 = vpop.permute.xlu0 %152 }
  0xb0   :  { %v157_v43 = vsel %vm156_vm3, %v151_v41, %v153_v42  ;;  %v158_v44 = vsel %vm156_vm3, %v153_v42, %v151_v41 }
  0xb1   :  { %v540_v45 = vsub.f32 %v157_v43, %v148_v36  ;;  %v542_v46 = vsub.f32 %v158_v44, %v149_v39 }
  0xb3   :  { %v545_v47 = vrot.slane %v540_v45, 4  ;;  %v548_v48 = vrot.slane %v542_v46, 4  ;;  %v554_v50 = vand.u32 2147483647, %v540_v45  ;;  %v562_v53 = vand.u32 2147483647, %v542_v46 }
  0xb4   :  { %vm237_vm6 = vcmp.eq.f32.partialorder %v540_v45, 0.0  ;;  %vm240_vm8 = vcmp.ne.f32.partialorder %v540_v45, %v540_v45  ;;  %vm284_vm12 = vcmp.eq.f32.partialorder %v542_v46, 0.0 }
  0xb5   :  { %v551_v49 = vand.u32 2147483647, %v545_v47  ;;  %v559_v52 = vand.u32 2147483647, %v548_v48  ;;  %vm235_vm5 = vcmp.lt.s32.totalorder %v545_v47, 0  ;;  %vm239_vm7 = vcmp.ne.f32.partialorder %v545_v47, %v545_v47 }
  0xb6   :  { %vm232_vm9 = vcmp.lt.f32.partialorder %v545_v47, 0.0  ;;  %v236_v39 = vsel %vm235_vm5, 3.1415927, %v494_v38  ;;  %vm282_vm13 = vcmp.lt.s32.totalorder %v548_v48, 0  ;;  %vm241_vm14 = vmor %vm239_vm7, %vm240_vm8  ;;  %vm246_vm15 = vcmp.eq.s32.totalorder %v554_v50, inf }
  0xb7   :  { %v208_v51 = vmax.f32 %v551_v49, %v554_v50  ;;  %v255_v54 = vmax.f32 %v559_v52, %v562_v53  ;;  %v207_v55 = vmin.f32 %v551_v49, %v554_v50  ;;  %v254_v58 = vmin.f32 %v559_v52, %v562_v53 }
  0xb8   :  { %vm229_vm4 = vcmp.gt.f32.partialorder %v554_v50, %v551_v49  ;;  %vm245_vm10 = vcmp.eq.s32.totalorder %v551_v49, inf  ;;  %vm276_vm11 = vcmp.gt.f32.partialorder %v562_v53, %v559_v52  ;;  %vm286_vm2 = vcmp.ne.f32.partialorder %v548_v48, %v548_v48 }
  0xb9   :  { %403 = vrcp.f32 %v208_v51  ;;  %v495_v51 = vmov 0.7853982   ;;  %vm279_vm5 = vcmp.lt.f32.partialorder %v548_v48, 0.0  ;;  %vm293_vm8 = vcmp.eq.s32.totalorder %v562_v53, inf }
  0xba   :  { %405 = vrcp.f32 %v255_v54  ;;  %v244_v54 = vsel %vm232_vm9, 2.3561945, %v495_v51  ;;  %v177_v53 = vmul.f32 %v540_v45, %v540_v45 }
  0xc6   :  { %v404_v56 = vpop.eup %403 }
  0xc7   :  { %v210_v57 = vmul.f32 %v404_v56, %v207_v55  ;;  %v406_v59 = vpop.eup %405 }
  0xc8   :  { %v257_v61 = vmul.f32 %v406_v59, %v254_v58  ;;  %v250_v58 = vand.u32 2147483648, %v540_v45  ;;  %v291_v59 = vsel %vm279_vm5, 2.3561945, %v495_v51 }
  0xc9   :  { %v211_v60 = vmul.f32 %v210_v57, %v210_v57 }
  0xca   :  { %v258_v63 = vmul.f32 %v257_v61, %v257_v61 }
  0xcb   :  { %v212_v62 = vmul.f32 0.002785687, %v211_v60 }
  0xcc   :  { %v259_v1 = vmul.f32 0.002785687, %v258_v63 }
  0xcd   :  { %v213_v0 = vadd.f32 -0.015866, %v212_v62 }
  0xce   :  { %v260_v3 = vadd.f32 -0.015866, %v259_v1 }
  0xcf   :  { %v214_v2 = vmul.f32 %v213_v0, %v211_v60 }
  0xd0   :  { %v261_v5 = vmul.f32 %v260_v3, %v258_v63 }
  0xd1   :  { %v215_v4 = vadd.f32 0.04247222, %v214_v2 }
  0xd2   :  { %v262_v7 = vadd.f32 0.04247222, %v261_v5  ;;  %v178_v5 = vmul.f32 %v542_v46, %v542_v46 }
  0xd3   :  { %v216_v6 = vmul.f32 %v215_v4, %v211_v60 }
  0xd4   :  { %v263_v9 = vmul.f32 %v262_v7, %v258_v63  ;;  %v182_v7 = vrot.slane %v178_v5, 4 }
  0xd5   :  { %v217_v8 = vadd.f32 -0.074975304, %v216_v6  ;;  %v181_v6 = vrot.slane %v177_v53, 4 }
  0xd6   :  { %v264_v11 = vadd.f32 -0.074975304, %v263_v9  ;;  %v186_v9 = vadd.f32 %v182_v7, %v178_v5 }
  0xd7   :  { %v218_v10 = vmul.f32 %v217_v8, %v211_v60  ;;  %v185_v8 = vadd.f32 %v181_v6, %v177_v53 }
  0xd8   :  { %v265_v13 = vmul.f32 %v264_v11, %v258_v63  ;;  %v164_v11 = vrot.slane %v542_v46, 2 }
  0xd9   :  { %v219_v12 = vadd.f32 0.1064488, %v218_v10  ;;  %407 = vrsqrt.f32 %v185_v8  ;;  %v163_v10 = vrot.slane %v540_v45, 2 }
  0xda   :  { %v266_v15 = vadd.f32 0.1064488, %v265_v13  ;;  %409 = vrsqrt.f32 %v186_v9 }
  0xdb   :  { %v220_v14 = vmul.f32 %v219_v12, %v211_v60 }
  0xdc   :  { %v267_v17 = vmul.f32 %v266_v15, %v258_v63  ;;  %v167_v15 = vmul.f32 %v163_v10, %v540_v45 }
  0xdd   :  { %v221_v16 = vadd.f32 -0.14207031, %v220_v14 }
  0xde   :  { %v268_v19 = vadd.f32 -0.14207031, %v267_v17 }
  0xdf   :  { %v222_v18 = vmul.f32 %v221_v16, %v211_v60  ;;  %v168_v16 = vmul.f32 %v164_v11, %v542_v46 }
  0xe0   :  { %v269_v21 = vmul.f32 %v268_v19, %v258_v63 }
  0xe1   :  { %v223_v20 = vadd.f32 0.19993454, %v222_v18 }
  0xe2   :  { %v270_v23 = vadd.f32 0.19993454, %v269_v21  ;;  %v172_v21 = vrot.slane %v168_v16, 4 }
  0xe3   :  { %v224_v22 = vmul.f32 %v223_v20, %v211_v60  ;;  %v171_v20 = vrot.slane %v167_v15, 4 }
  0xe4   :  { %v271_v25 = vmul.f32 %v270_v23, %v258_v63 }
  0xe5   :  { %v225_v24 = vadd.f32 -0.33333147, %v224_v22 }
  0xe6   :  { %v272_v27 = vadd.f32 -0.33333147, %v271_v25  ;;  %v408_v12 = vpop.eup %407 }
  0xe7   :  { %v226_v26 = vmul.f32 %v225_v24, %v211_v60  ;;  %v410_v13 = vpop.eup %409  ;;  %v191_v17 = vrot.slane %v408_v12, 2 }
  0xe8   :  { %v273_v29 = vmul.f32 %v272_v27, %v258_v63  ;;  %v192_v18 = vrot.slane %v410_v13, 2  ;;  %v176_v27 = vadd.f32 %v172_v21, %v168_v16 }
  0xe9   :  { %v227_v28 = vmul.f32 %v226_v26, %v210_v57  ;;  %v195_v22 = vmul.f32 %v408_v12, %v191_v17  ;;  %v175_v26 = vadd.f32 %v171_v20, %v167_v15 }
  0xea   :  { %v274_v31 = vmul.f32 %v273_v29, %v257_v61  ;;  %v196_v23 = vmul.f32 %v410_v13, %v192_v18 }
  0xeb   :  { %v228_v30 = vadd.f32 %v227_v28, %v210_v57  ;;  %v283_v57 = vsel %vm282_vm13, 3.1415927, %v494_v38 }
  0xec   :  { %v275_v33 = vadd.f32 %v274_v31, %v257_v61  ;;  %v297_v61 = vand.u32 2147483648, %v542_v46 }
  0xed   :  { %v230_v32 = vsub.f32 1.5707964, %v228_v30 }
  0xee   :  { %v277_v36 = vsub.f32 1.5707964, %v275_v33 }
  0xef   :  { %v231_v34 = vsel %vm229_vm4, %v230_v32, %v228_v30  ;;  %vm247_vm4 = vmand %vm245_vm10, %vm246_vm15  ;;  %vm317_vm10 = vcmp.lt.s32.totalorder %v533_v40, 1  ;;  %v197_v32 = vmul.f32 %v195_v22, %v175_v26 }
  0xf0   :  { %v233_v35 = vsub.f32 3.1415927, %v231_v34  ;;  %v278_v41 = vsel %vm276_vm11, %v277_v36, %v275_v33  ;;  %vm292_vm11 = vcmp.eq.s32.totalorder %v559_v52, inf  ;;  %v198_v33 = vmul.f32 %v196_v23, %v176_v27 }
  0xf1   :  { %v280_v43 = vsub.f32 3.1415927, %v278_v41  ;;  %v199_v38 = vsub.f32 1.0, %v197_v32 }
  0xf2   :  { %v234_v37 = vsel %vm232_vm9, %v233_v35, %v231_v34  ;;  %vm294_vm9 = vmand %vm292_vm11, %vm293_vm8 }
  0xf3   :  { %v238_v42 = vsel %vm237_vm6, %v236_v39, %v234_v37  ;;  %v281_v56 = vsel %vm279_vm5, %v280_v43, %v278_v41  ;;  %vm287_vm6 = vcmp.ne.f32.partialorder %v542_v46, %v542_v46  ;;  %v200_v39 = vsub.f32 1.0, %v198_v33 }
  0xf4   :  { %v242_v44 = vsel %vm241_vm14, nan, %v238_v42  ;;  %v285_v47 = vsel %vm284_vm12, %v283_v57, %v281_v56  ;;  %vm288_vm7 = vmor %vm286_vm2, %vm287_vm6 }
  0xf5   :  { %v248_v55 = vsel %vm247_vm4, %v244_v54, %v242_v44  ;;  %v289_v49 = vsel %vm288_vm7, nan, %v285_v47 }
  0xf6   :  { %v249_v50 = vand.u32 2147483647, %v248_v55  ;;  %v295_v52 = vsel %vm294_vm9, %v291_v59, %v289_v49 }
  0xf7   :  { %v296_v60 = vand.u32 2147483647, %v295_v52 }
  0xf8   :  { %v251_v48 = vor.u32 %v250_v58, %v249_v50 }
  0xf9   :  { %v298_v63 = vor.u32 %v297_v61, %v296_v60 }
  0xfa   :  { %v301_v62 = vrot.slane %v251_v48, 2 }
  0xfb   :  { %v302_v1 = vrot.slane %v298_v63, 2 }
  0xfc   :  { %v305_v0 = vsub.f32 %v251_v48, %v301_v62 }
  0xfd   :  { %v306_v3 = vsub.f32 %v298_v63, %v302_v1 }
  0xfe   :  { %v309_v2 = vrot.slane %v305_v0, 4 }
  0xff   :  { %v310_v4 = vrot.slane %v306_v3, 4 }
 0x100   :  { %320 = vrot.lane.b32.xlu0 %v309_v2, %s493_s0  ;;  %313 = vrot.lane.b32.xlu1 %v309_v2, %s496_s2 }
 0x104   :  { %315 = vrot.lane.b32.xlu1 %v310_v4, %s496_s2 }
 0x108   :  { %322 = vrot.lane.b32.xlu1 %v310_v4, %s493_s0 }
 0x172   :  { %v314_v14 = vpop.permute.xlu1 %313  ;;  %v321_v24 = vpop.permute.xlu0 %320 }
 0x176   :  { %v316_v19 = vpop.permute.xlu1 %315 }
 0x177   :  { %v318_v28 = vsel %vm317_vm10, %v314_v14, %v316_v19  ;;  %v319_v29 = vsel %vm317_vm10, %v316_v19, %v314_v14 }
 0x17a   :  { %v323_v25 = vpop.permute.xlu1 %322 }
 0x17b   :  { %v324_v45 = vsel %vm156_vm3, %v321_v24, %v323_v25  ;;  %v325_v46 = vsel %vm156_vm3, %v323_v25, %v321_v24  ;;  %vm343_vm3 = vcmask 1024  }
 0x17c   :  { %v326_v30 = vsub.f32 %v319_v29, %v324_v45  ;;  %v327_v31 = vsub.f32 %v318_v28, %v325_v46 }
 0x17e   :  { %v328_v34 = vand.u32 2147483647, %v326_v30  ;;  %v329_v35 = vand.u32 2147483647, %v327_v31 }
 0x180   :  { %v332_v36 = vrot.slane %v328_v34, 6  ;;  %v333_v37 = vrot.slane %v329_v35, 6 }
 0x182   :  { %v336_v41 = vsel %vm141_vm0, %v199_v38, %v332_v36  ;;  %v337_v42 = vsel %vm141_vm0, %v200_v39, %v333_v37 }
 0x183   :  { %v338_v43 = vsel %vm144_vm1, %v336_v41, 0.0  ;;  %v339_v44 = vsel %vm144_vm1, %v337_v42, 0.0 }
 0x184   :  { %v340_v40 = vadd.f32 %v339_v44, %v338_v43 }
 0x186   :  { %341 = vadd.xlane.f32.xlu0 %v340_v40 }
 0x20f   :  { %v342_v51 = vpop.xlane.xlu0 %341 }
 0x210   :  { %v358_v54 = vrot.slane %v342_v51, 2  ;;  %v344_v55 = vsel %vm343_vm3, %v342_v51, 0.0 }
 0x211   :  { %345 = vadd.xlane.f32.xlu1 %v344_v55 }
 0x212   :  { %v360_v56 = vsel %vm343_vm3, %v358_v54, 0.0 }
 0x213   :  { %361 = vadd.xlane.f32.xlu0 %v360_v56 }
 0x29a   :  { %v346_v57 = vpop.xlane.xlu1 %345 }
 0x29b   :  { %v347_v50 = vrot.slane %v346_v57, 4 }
 0x29c   :  { %v362_v58 = vpop.xlane.xlu0 %361 }
 0x29d   :  { %v348_v47 = vadd.f32 %v347_v50, %v346_v57  ;;  %v363_v49 = vrot.slane %v362_v58, 4 }
 0x29f   :  { %v349_v59 = vrot.slane %v348_v47, 2  ;;  %v364_v48 = vadd.f32 %v363_v49, %v362_v58 }
 0x2a1   :  { %v365_v52 = vrot.slane %v364_v48, 2  ;;  %v350_v60 = vadd.f32 %v349_v59, %v348_v47 }
 0x2a3   :  { %v366_v61 = vadd.f32 %v365_v52, %v364_v48  ;;  %v351_v62 = vrot.slane %v350_v60, 1 }
 0x2a5   :  { %v352_v63 = vadd.f32 %v351_v62, %v350_v60  ;;  %v367_v0 = vrot.slane %v366_v61, 1 }
 0x2a7   :  { %390 = vpush %v352_v63  ;;  %v368_v1 = vadd.f32 %v367_v0, %v366_v61 }
 0x2a9   :  { %392 = vpush %v368_v1 }
 0x2d8   :  { %s391_s29 = spop %390 }
 0x2d9   :  { %s354_s30 = smul.f32 0.001953125, %s391_s29 }
 0x2da   :  { %s393_s4 = spop %392 }
 0x2db   :  { %356 = sst [smem:[#allocation8]] %s354_s30  ;;  %s370_s5 = smul.f32 0.001953125, %s393_s4 }
 0x2dd   :  { %372 = sst [smem:[#allocation8 + $0x1]] %s370_s5 }
 0x2de   :  { %482 = shalt.err (!%p479_p5)
}
 0x2df   :  { %s497_s7 = smov [#allocation8]  }
 0x2e0   :  { %382 = dma.smem_to_vmem %s497_s7, 16, %s380_s28, [#allocation4]  }
 0x2e1   :  { %487 = dma.done.wait [#allocation4], 16  }
 0x2e2   :  { %488 = vsyncadd [#allocation4], 4294967280 }
 0x2e3   :  { %386 = sfence }
 0x2e4   :  { %387 = vsyncpa [#allocation3], 1 }
 0x2e5   :  { %388 = vsyncpa [#allocation6], 1 }
 0x2e6   :  { %389 = vsyncpa [#allocation4], 1 }

</bundles_post_ra>
